<compile_context>
chip_gen: v6e
topology: v6e:2x2x1
jax: 0.10.0
libtpu: 0.0.40
codegen_flags: <defaults>
</compile_context>

<pallas_src>
import functools

import numpy as np
import jax
import jax.numpy as jnp
from jax import lax
from jax.experimental import pallas as pl
from jax.experimental.pallas import tpu as pltpu

MAX_GT = 5  # static upper bound on gt-box ids (id 0 == "no box", skipped)
# TODO(synk): gt ids > MAX_GT are silently dropped (static bound replaces the
#             dynamic python-dict grouping of the torch reference).


# ---------------------------------------------------------------------------
# Generation-aware VMEM budgets
# ---------------------------------------------------------------------------
@functools.lru_cache(maxsize=None)
def _gen_vmem_params():
    """Returns (per-call input-tile budget bytes, scoped vmem_limit_bytes)."""
    try:
        info = pltpu.get_tpu_info()
        vmem_phys = int(getattr(info, "vmem_capacity_bytes", 64 * 1024 * 1024))
    except Exception:
        vmem_phys = 64 * 1024 * 1024
    if vmem_phys >= 96 * 1024 * 1024:
        # v5e / v6e: 128 MiB physical VMEM -> large tiles, large scoped limit
        return 20 * 1024 * 1024, 64 * 1024 * 1024
    # v7x: 64 MiB per TensorCore -> conservative tiles / scoped limit
    return 8 * 1024 * 1024, 40 * 1024 * 1024


# ---------------------------------------------------------------------------
# Kernel 0: "prep" — reads the (B, A, nc) score tensors once, in their native
# layout, and emits lane-dense (B, 1, A) p_dif and gathered student scores.
# ---------------------------------------------------------------------------
def _prep_kernel(tps_ref, sps_ref, idx_ref, pdif_ref, sts_ref, *, inv_nc, nc):
    t_sig = jax.nn.sigmoid(tps_ref[...].astype(jnp.float32))        # (1, A, nc)
    s_raw = sps_ref[...].astype(jnp.float32)                        # (1, A, nc)
    s_sig = jax.nn.sigmoid(s_raw)
    d2 = (t_sig - s_sig) ** 2                                       # (1, A, nc)

    # fused gather: one-hot over the nc lane axis (no XLA take_along_axis)
    cls = lax.broadcasted_iota(jnp.int32, s_raw.shape, 2)           # (1, A, nc)
    onehot = (cls == idx_ref[...]).astype(jnp.float32)              # (1, A, nc)
    gathered = s_raw * onehot

    # contract nc with a (1,1,nc) ones row -> lane-dense (1, 1, A) results
    # (MXU/VPU contraction; avoids any sublane->lane relayout).
    ones_row = jnp.ones((1, 1, nc), jnp.float32)
    dn = (((2,), (2,)), ((0,), (0,)))
    pdif = lax.dot_general(ones_row, d2, dn,
                           preferred_element_type=jnp.float32) * inv_nc
    sts = lax.dot_general(ones_row, gathered, dn,
                          preferred_element_type=jnp.float32)
    pdif_ref[...] = pdif                                            # (1, 1, A)
    sts_ref[...] = sts                                              # (1, 1, A)


def prep_pallas(tea_pred_scores, stu_pred_scores, tea_id_target_cls):
    B, A, nc = tea_pred_scores.shape
    _, vmem_limit = _gen_vmem_params()
    idx = tea_id_target_cls.astype(jnp.int32).reshape(B, A, 1)      # free view
    kernel = functools.partial(_prep_kernel, inv_nc=1.0 / nc, nc=nc)
    pdif, sts = pl.pallas_call(
        kernel,
        out_shape=(jax.ShapeDtypeStruct((B, 1, A), jnp.float32),
                   jax.ShapeDtypeStruct((B, 1, A), jnp.float32)),
        grid=(B,),
        in_specs=[pl.BlockSpec((1, A, nc), lambda b: (b, 0, 0)),
                  pl.BlockSpec((1, A, nc), lambda b: (b, 0, 0)),
                  pl.BlockSpec((1, A, 1), lambda b: (b, 0, 0))],
        out_specs=(pl.BlockSpec((1, 1, A), lambda b: (b, 0, 0)),
                   pl.BlockSpec((1, 1, A), lambda b: (b, 0, 0))),
        compiler_params=pltpu.CompilerParams(
            dimension_semantics=("parallel",),
            vmem_limit_bytes=vmem_limit),
    )(tea_pred_scores, stu_pred_scores, idx)
    return pdif, sts


# ---------------------------------------------------------------------------
# Kernel 1: imitation term for one pyramid level.
#   grid = (B, n_par, n_inner); batch and the HW split are "parallel"
#   (megacore), the inner HW reduction is "arbitrary" and accumulates into a
#   lane-shaped VMEM scratch; one cross-lane reduce + store at the last tile.
# ---------------------------------------------------------------------------
def _imi_kernel(pdif_ref, tf_ref, sf_ref, out_ref, acc_ref,
                *, inv_c, inv_hw, hw, hw_tile, has_partial):
    t = pl.program_id(2)

    @pl.when(t == 0)
    def _():
        acc_ref[...] = jnp.zeros_like(acc_ref)

    pdif = pdif_ref[...].astype(jnp.float32)                        # (1, 1, T)
    tf = tf_ref[...].astype(jnp.float32)                            # (1, C, T)
    sf = sf_ref[...].astype(jnp.float32)
    fd = tf - sf
    # mean over channels == torch .mean(dim=1) on NCHW
    f_dif = jnp.sum(fd * fd, axis=1, keepdims=True) * inv_c         # (1, 1, T)
    prod = pdif * f_dif
    prod2 = prod * prod
    if has_partial:
        # mask lanes past the true HW extent in the (padded) last tile
        base = (pl.program_id(1) * pl.num_programs(2) + t) * hw_tile
        lane = lax.broadcasted_iota(jnp.int32, prod2.shape, 2) + base
        prod2 = jnp.where(lane < hw, prod2, 0.0)
    acc_ref[...] += prod2                                           # VALU only

    @pl.when(t == pl.num_programs(2) - 1)
    def _():
        out_ref[...] = (jnp.sum(acc_ref[...], axis=-1, keepdims=True)
                        * inv_hw).reshape(out_ref.shape)


def _choose_hw_tiling(hw, per_lane_bytes, budget_bytes):
    """Largest multiple-of-128 lane tile within the (double-buffered) budget."""
    budget_elems = max(budget_bytes // max(per_lane_bytes, 1), 128)
    if hw <= 128 or hw <= budget_elems:
        return hw, 1, False
    tile = min((budget_elems // 128) * 128, (hw // 128) * 128)
    tile = max(tile, 128)
    n_tiles = -(-hw // tile)
    return tile, int(n_tiles), (hw % tile != 0)


def imi_level(p_dif, tea_f, stu_f):
    """One pyramid level. p_dif: (B, 1, HW) f32; tea_f/stu_f: (B, C, HW)."""
    B, _, HW = p_dif.shape
    C = tea_f.shape[1]
    feat_bytes = tea_f.dtype.itemsize
    budget, vmem_limit = _gen_vmem_params()
    # double-buffered input bytes per lane element (two feature tensors + pdif)
    per_lane_bytes = 2 * (2 * C * feat_bytes + 4)
    hw_tile, n_tiles, has_partial = _choose_hw_tiling(HW, per_lane_bytes, budget)

    # split HW tiles across an extra parallel axis so both v7x TensorCores
    # stream HBM even when B is small
    n_par = 2 if (n_tiles % 2 == 0 and n_tiles >= 2) else 1
    n_inner = n_tiles // n_par

    kernel = functools.partial(_imi_kernel, inv_c=1.0 / C, inv_hw=1.0 / HW,
                               hw=HW, hw_tile=hw_tile, has_partial=has_partial)

    out = pl.pallas_call(
        kernel,
        out_shape=jax.ShapeDtypeStruct((B, n_par, 1, 1), jnp.float32),
        grid=(B, n_par, n_inner),
        in_specs=[
            pl.BlockSpec((1, 1, hw_tile),
                         lambda b, p, t: (b, 0, p * n_inner + t)),
            pl.BlockSpec((1, C, hw_tile),
                         lambda b, p, t: (b, 0, p * n_inner + t)),
            pl.BlockSpec((1, C, hw_tile),
                         lambda b, p, t: (b, 0, p * n_inner + t)),
        ],
        out_specs=pl.BlockSpec((1, 1, 1, 1), lambda b, p, t: (b, p, 0, 0)),
        scratch_shapes=[pltpu.VMEM((1, 1, hw_tile), jnp.float32)],
        compiler_params=pltpu.CompilerParams(
            dimension_semantics=("parallel", "parallel", "arbitrary"),
            vmem_limit_bytes=vmem_limit),
    )(p_dif, tea_f, stu_f)
    per_batch = jnp.sum(out[:, :, 0, 0], axis=1)       # (B,) == tmp_norm
    return jnp.mean(per_batch)                          # tmp_norm.mean()


# ---------------------------------------------------------------------------
# Kernel 2: head distillation loss — per-batch blocks, lane-axis reductions,
# algebraically simplified masked-softmax KLD, stacked score/IoU pair,
# statically unrolled group loop with hoisted exponentials.
# ---------------------------------------------------------------------------
def _head_kernel(gt_ref, tts_ref, sts_ref, tiou_ref, siou_ref, out_ref):
    gt = gt_ref[...]                                                 # (1,1,A) i32
    tsc = jax.nn.sigmoid(tts_ref[...].astype(jnp.float32))
    ssc = jax.nn.sigmoid(sts_ref[...].astype(jnp.float32))
    tiou = tiou_ref[...].astype(jnp.float32)
    siou = siou_ref[...].astype(jnp.float32)

    n_box = jnp.max(gt.astype(jnp.float32), axis=-1, keepdims=True)  # (1,1,1)

    # stack (scores, ious) on the sublane axis -> one masked pass per group
    p_log = jnp.concatenate([ssc, siou], axis=1)                     # student
    q_log = jnp.concatenate([tsc, tiou], axis=1)                     # teacher

    # hoisted out of the group loop; inputs in [0,1] -> no max-shift needed
    ep = jnp.exp(p_log)
    eq = jnp.exp(q_log)
    w = eq * (q_log - p_log)

    tmp = jnp.zeros((1, 1, 1), jnp.float32)
    for g in range(1, MAX_GT + 1):                 # static unroll over gt ids
        m = gt == g                                                  # (1,1,A)
        m2 = jnp.concatenate([m, m], axis=1)                         # (1,2,A)
        ps = jnp.maximum(jnp.sum(jnp.where(m2, ep, 0.0), -1, keepdims=True),
                         1e-30)
        qs = jnp.maximum(jnp.sum(jnp.where(m2, eq, 0.0), -1, keepdims=True),
                         1e-30)
        # KLD(softmax_m(p)||softmax_m(q)) in torch's sum(-q*log(p/q)) form:
        #   sum(q*(q_log - p_log)) + log(sum_m e^p_log) - log(sum_m e^q_log)
        kld = (jnp.sum(jnp.where(m2, w, 0.0), -1, keepdims=True)
               * pl.reciprocal(qs, approx=True)
               + jnp.log(ps) - jnp.log(qs))                          # (1,2,1)
        contrib = jnp.sum(kld, axis=1, keepdims=True)                # (1,1,1)
        # empty-group gate (non-empty groups have qs >= 1, empty -> 1e-30)
        tmp = tmp + jnp.where(qs[:, :1, :] > 0.5, contrib, 0.0)

    out_ref[...] = tmp / (n_box + 1.0)


def head_loss_pallas(tea_gt_ids, tea_target_scores, stu_target_scores,
                     tea_ious, stu_ious):
    B, _, A = stu_target_scores.shape            # (B,1,A) from the prep kernel

    def r(x):                                     # free (B, A) -> (B, 1, A)
        return x.reshape(B, 1, A)

    out = pl.pallas_call(
        _head_kernel,
        out_shape=jax.ShapeDtypeStruct((B, 1, 1), jnp.float32),
        grid=(B,),
        in_specs=[pl.BlockSpec((1, 1, A), lambda b: (b, 0, 0))] * 5,
        out_specs=pl.BlockSpec((1, 1, 1), lambda b: (b, 0, 0)),
        compiler_params=pltpu.CompilerParams(
            dimension_semantics=("parallel",)),
    )(r(tea_gt_ids.astype(jnp.int32)),
      r(tea_target_scores),
      stu_target_scores,
      r(tea_ious),
      r(stu_ious))
    return out[:, 0, 0]


# ---------------------------------------------------------------------------
# RMPG forward (glue + kernels)
# ---------------------------------------------------------------------------
def rmpg_forward(y_pred, y_true, stu_ious, stu_pred_scores, tea_ious,
                 tea_target_scores, tea_gt_ids, tea_id_target_cls,
                 tea_pred_scores):
    B = stu_pred_scores.shape[0]

    # prep: p_dif over all anchors + fused student-target-score gather
    p_dif_all, stu_target_scores = prep_pallas(
        tea_pred_scores, stu_pred_scores, tea_id_target_cls)

    # L_head (mean over batch == sum / B)
    L_head = jnp.mean(head_loss_pallas(
        tea_gt_ids, tea_target_scores, stu_target_scores, tea_ious, stu_ious))

    # L_imi: features keep native NCHW via a free (B, C, H*W) view; the tiny
    # p_dif slab is sliced per level from the lane-dense (B, 1, A) array.
    sizes = [f.shape[2] * f.shape[3] for f in y_pred]
    offs = np.cumsum([0] + sizes)
    L_imi = jnp.float32(0.0)
    for i, (sf, tf) in enumerate(zip(y_pred, y_true)):
        C, H, W = sf.shape[1], sf.shape[2], sf.shape[3]
        hw = H * W
        lo, hi = int(offs[i]), int(offs[i + 1])
        pd_lvl = p_dif_all[:, :, lo:hi]                              # (B,1,hw)
        L_imi = L_imi + imi_level(pd_lvl,
                                  tf.reshape(B, C, hw), sf.reshape(B, C, hw))
    L_imi = L_imi / len(y_pred)

    return 1.5 * L_imi + 4.0 * L_head


# ---------------------------------------------------------------------------
# Pure numpy reference (mirrors the torch code, incl. dict-based grouping)
# ---------------------------------------------------------------------------
def _sigmoid_np(x):
    return 1.0 / (1.0 + np.exp(-x))


def _softmax_np(x):
    e = np.exp(x - x.max())
    return e / e.sum()


def _kld_np(p, q):
    return np.sum(-q * np.log(p / q))


def rmpg_reference(y_pred, y_true, stu_ious, stu_pred_scores, tea_ious,
                   tea_target_scores, tea_gt_ids, tea_id_target_cls,
                   tea_pred_scores):
    y_pred = [np.asarray(a, np.float64) for a in y_pred]
    y_true = [np.asarray(a, np.float64) for a in y_true]
    stu_ious = np.asarray(stu_ious, np.float64)
    tea_ious = np.asarray(tea_ious, np.float64)
    stu_ps = np.asarray(stu_pred_scores, np.float64)
    tea_ps = np.asarray(tea_pred_scores, np.float64)
    tea_ts = np.asarray(tea_target_scores, np.float64)
    gt_ids = np.asarray(tea_gt_ids)
    id_cls = np.asarray(tea_id_target_cls)

    B, A, nc = stu_ps.shape
    stu_ts = stu_ps[np.arange(B)[:, None], np.arange(A)[None, :], id_cls]

    # head loss
    t_loss = 0.0
    s_ts_sig = _sigmoid_np(stu_ts)
    t_ts_sig = _sigmoid_np(tea_ts)
    for b in range(B):
        n_box = int(gt_ids[b].max())
        groups = {}
        for i in range(A):
            g = int(gt_ids[b, i])
            if g == 0:
                continue
            groups.setdefault(g, []).append(i)
        tmp = 0.0
        for g in range(0, n_box + 1):
            if g in groups:
                idx = groups[g]
                tmp += _kld_np(_softmax_np(s_ts_sig[b, idx]),
                               _softmax_np(t_ts_sig[b, idx]))
                tmp += _kld_np(_softmax_np(stu_ious[b, idx]),
                               _softmax_np(tea_ious[b, idx]))
        t_loss += tmp / (n_box + 1)
    L_head = t_loss / B

    # imitation loss
    sizes = [f.shape[2] * f.shape[3] for f in y_pred]
    offs = np.cumsum([0] + sizes)
    s_maps = _sigmoid_np(stu_ps)
    t_maps = _sigmoid_np(tea_ps)
    L_imi = 0.0
    for i, (sf, tf) in enumerate(zip(y_pred, y_true)):
        H, W = sf.shape[2], sf.shape[3]
        s_pm = s_maps[:, offs[i]:offs[i + 1], :].reshape(B, H, W, nc)
        t_pm = t_maps[:, offs[i]:offs[i + 1], :].reshape(B, H, W, nc)
        p_dif = ((t_pm - s_pm) ** 2).mean(axis=-1)
        f_dif = ((tf - sf) ** 2).mean(axis=1)
        prod = p_dif * f_dif
        tmp_norm = (prod ** 2).sum(axis=(1, 2)) / (H * W)
        L_imi += tmp_norm.mean()
    L_imi /= len(y_pred)

    return 1.5 * L_imi + 4.0 * L_head


# ---------------------------------------------------------------------------
if __name__ == "__main__":
    key = jax.random.PRNGKey(0)
    ks = jax.random.split(key, 12)

    B, C, nc = 2, 4, 4
    hw_sizes = [8, 4]                       # two pyramid levels
    A = sum(h * h for h in hw_sizes)        # 80 anchors total

    y_pred = [jax.random.normal(ks[i], (B, C, h, h), jnp.float32)
              for i, h in enumerate(hw_sizes)]
    y_true = [jax.random.normal(ks[2 + i], (B, C, h, h), jnp.float32)
              for i, h in enumerate(hw_sizes)]

    stu_pred_scores = jax.random.normal(ks[4], (B, A, nc), jnp.float32)
    tea_pred_scores = jax.random.normal(ks[5], (B, A, nc), jnp.float32)
    tea_target_scores = jax.random.normal(ks[6], (B, A), jnp.float32)
    stu_ious = jax.random.uniform(ks[7], (B, A), jnp.float32)
    tea_ious = jax.random.uniform(ks[8], (B, A), jnp.float32)
    tea_gt_ids = jax.random.randint(ks[9], (B, A), 0, MAX_GT + 1)
    tea_id_target_cls = jax.random.randint(ks[10], (B, A), 0, nc)

    loss = rmpg_forward(y_pred, y_true,
                        stu_ious, stu_pred_scores,
                        tea_ious, tea_target_scores, tea_gt_ids,
                        tea_id_target_cls, tea_pred_scores)
    loss = jax.block_until_ready(loss)

    ref = rmpg_reference(y_pred, y_true, stu_ious, stu_pred_scores, tea_ious,
                         tea_target_scores, tea_gt_ids, tea_id_target_cls,
                         tea_pred_scores)

    np.testing.assert_allclose(np.asarray(loss, np.float64), ref,
                               rtol=5e-3, atol=1e-3)
    print("KERNEL_OK")
</pallas_src>

<mosaic_0001>
module attributes {stable_mosaic.version = 11 : i64} {
  func.func @_prep_kernel(%arg0: i32, %arg1: memref<1x80x4xf32, #tpu.memory_space<vmem>>, %arg2: memref<1x80x4xf32, #tpu.memory_space<vmem>>, %arg3: memref<1x80x1xi32, #tpu.memory_space<vmem>>, %arg4: memref<1x1x80xf32, #tpu.memory_space<vmem>>, %arg5: memref<1x1x80xf32, #tpu.memory_space<vmem>>) attributes {dimension_semantics = [#tpu.dimension_semantics<parallel>], iteration_bounds = array<i64: 2>, scalar_prefetch = 0 : i64, scratch_operands = 0 : i64, tpu.core_type = #tpu.core_type<tc>, window_params = [{transform_indices = @transform_0, window_bounds = array<i64: 1, 80, 4>}, {transform_indices = @transform_1, window_bounds = array<i64: 1, 80, 4>}, {transform_indices = @transform_2, window_bounds = array<i64: 1, 80, 1>}, {transform_indices = @transform_3, window_bounds = array<i64: 1, 1, 80>}, {transform_indices = @transform_4, window_bounds = array<i64: 1, 1, 80>}]} {
    %c0 = arith.constant 0 : index
    %c0_0 = arith.constant 0 : index
    %c0_1 = arith.constant 0 : index
    %0 = vector.load %arg1[%c0, %c0_0, %c0_1] : memref<1x80x4xf32, #tpu.memory_space<vmem>>, vector<1x80x4xf32>
    %1 = arith.negf %0 : vector<1x80x4xf32>
    %2 = math.exp %1 : vector<1x80x4xf32>
    %cst = arith.constant 1.000000e+00 : f32
    %3 = vector.broadcast %cst : f32 to vector<1x80x4xf32>
    %4 = arith.addf %3, %2 : vector<1x80x4xf32>
    %5 = arith.divf %3, %4 : vector<1x80x4xf32>
    %c0_2 = arith.constant 0 : index
    %c0_3 = arith.constant 0 : index
    %c0_4 = arith.constant 0 : index
    %6 = vector.load %arg2[%c0_2, %c0_3, %c0_4] : memref<1x80x4xf32, #tpu.memory_space<vmem>>, vector<1x80x4xf32>
    %7 = arith.negf %6 : vector<1x80x4xf32>
    %8 = math.exp %7 : vector<1x80x4xf32>
    %cst_5 = arith.constant 1.000000e+00 : f32
    %9 = vector.broadcast %cst_5 : f32 to vector<1x80x4xf32>
    %10 = arith.addf %9, %8 : vector<1x80x4xf32>
    %11 = arith.divf %9, %10 : vector<1x80x4xf32>
    %12 = arith.subf %5, %11 : vector<1x80x4xf32>
    %13 = arith.mulf %12, %12 : vector<1x80x4xf32>
    %14 = tpu.iota {dimensions = array<i32: 2>} : vector<1x80x4xi32>
    %c0_6 = arith.constant 0 : index
    %c0_7 = arith.constant 0 : index
    %c0_8 = arith.constant 0 : index
    %15 = vector.load %arg3[%c0_6, %c0_7, %c0_8] : memref<1x80x1xi32, #tpu.memory_space<vmem>>, vector<1x80x1xi32>
    %16 = vector.broadcast %15 : vector<1x80x1xi32> to vector<1x80x4xi32>
    %17 = arith.cmpi eq, %14, %16 : vector<1x80x4xi32>
    %18 = arith.extui %17 : vector<1x80x4xi1> to vector<1x80x4xi32>
    %19 = arith.sitofp %18 : vector<1x80x4xi32> to vector<1x80x4xf32>
    %20 = arith.mulf %6, %19 : vector<1x80x4xf32>
    %cst_9 = arith.constant 1.000000e+00 : f32
    %21 = vector.broadcast %cst_9 : f32 to vector<1x1x4xf32>
    %cst_10 = arith.constant dense<0.000000e+00> : vector<1x1x80xf32>
    %22 = tpu.matmul %21, %13, %cst_10 {dimension_numbers = #tpu.dot_dimension_numbers<[2], [2], [1], [1], [0, 0, 0, 1, 1, 1], [0], [0]>} : vector<1x1x4xf32>, vector<1x80x4xf32>, vector<1x1x80xf32> -> vector<1x1x80xf32>
    %cst_11 = arith.constant 2.500000e-01 : f32
    %23 = vector.broadcast %cst_11 : f32 to vector<1x1x80xf32>
    %24 = arith.mulf %22, %23 : vector<1x1x80xf32>
    %cst_12 = arith.constant dense<0.000000e+00> : vector<1x1x80xf32>
    %25 = tpu.matmul %21, %20, %cst_12 {dimension_numbers = #tpu.dot_dimension_numbers<[2], [2], [1], [1], [0, 0, 0, 1, 1, 1], [0], [0]>} : vector<1x1x4xf32>, vector<1x80x4xf32>, vector<1x1x80xf32> -> vector<1x1x80xf32>
    %c0_13 = arith.constant 0 : index
    %c0_14 = arith.constant 0 : index
    %c0_15 = arith.constant 0 : index
    %26 = vector.load %arg4[%c0_13, %c0_14, %c0_15] : memref<1x1x80xf32, #tpu.memory_space<vmem>>, vector<1x1x80xf32>
    tpu.vector_store %arg4[%c0_13, %c0_14, %c0_15], %24 {strides = array<i32>} : memref<1x1x80xf32, #tpu.memory_space<vmem>>, vector<1x1x80xf32>,
    %c0_16 = arith.constant 0 : index
    %c0_17 = arith.constant 0 : index
    %c0_18 = arith.constant 0 : index
    %27 = vector.load %arg5[%c0_16, %c0_17, %c0_18] : memref<1x1x80xf32, #tpu.memory_space<vmem>>, vector<1x1x80xf32>
    tpu.vector_store %arg5[%c0_16, %c0_17, %c0_18], %25 {strides = array<i32>} : memref<1x1x80xf32, #tpu.memory_space<vmem>>, vector<1x1x80xf32>,
    return
  }
  func.func @transform_0(%arg0: i32) -> (i32, i32, i32) {
    %c0_i32 = arith.constant 0 : i32
    %c0_i32_0 = arith.constant 0 : i32
    %c0_i32_1 = arith.constant 0 : i32
    return %arg0, %c0_i32, %c0_i32_0 : i32, i32, i32
  }
  func.func @transform_1(%arg0: i32) -> (i32, i32, i32) {
    %c0_i32 = arith.constant 0 : i32
    %c0_i32_0 = arith.constant 0 : i32
    %c0_i32_1 = arith.constant 0 : i32
    return %arg0, %c0_i32, %c0_i32_0 : i32, i32, i32
  }
  func.func @transform_2(%arg0: i32) -> (i32, i32, i32) {
    %c0_i32 = arith.constant 0 : i32
    %c0_i32_0 = arith.constant 0 : i32
    %c0_i32_1 = arith.constant 0 : i32
    return %arg0, %c0_i32, %c0_i32_0 : i32, i32, i32
  }
  func.func @transform_3(%arg0: i32) -> (i32, i32, i32) {
    %c0_i32 = arith.constant 0 : i32
    %c0_i32_0 = arith.constant 0 : i32
    %c0_i32_1 = arith.constant 0 : i32
    return %arg0, %c0_i32, %c0_i32_0 : i32, i32, i32
  }
  func.func @transform_4(%arg0: i32) -> (i32, i32, i32) {
    %c0_i32 = arith.constant 0 : i32
    %c0_i32_0 = arith.constant 0 : i32
    %c0_i32_1 = arith.constant 0 : i32
    return %arg0, %c0_i32, %c0_i32_0 : i32, i32, i32
  }
}

</mosaic_0001>

<bundles_post_ra>
// kernel: tpu_custom_call.1
= control target key start
LH: loop header
LB: loop body
LE: loop exit
PB: predicated region body
PF: predicated region fallthrough
CT: control target
= control target key end

     0   :  { %10 = vsyncpa [#allocation3], 0  ;;  %s1487_s0 = inlined_call_operand.vmem [shape: f32[2,80,4], index: 0, kind: input, shape index: {}]   ;;  %s1488_s1 = inlined_call_operand.vmem [shape: f32[2,80,4], index: 1, kind: input, shape index: {}]   ;;  %s1489_s2 = inlined_call_operand.vmem [shape: s32[2,80,1], index: 2, kind: input, shape index: {}]   ;;  %s1490_s3 = inlined_call_operand.hbm [shape: f32[2,1,80], index: 3, kind: output, shape index: {0}]   ;;  %s1491_s4 = inlined_call_operand.hbm [shape: f32[2,1,80], index: 4, kind: output, shape index: {1}]  }
   0x1   :  { %12 = vsyncpa [#allocation3 + $0x1], 0 }
   0x2   :  { %13 = vsyncpa [#allocation5], 0 }
   0x3   :  { %15 = vsyncpa [#allocation5 + $0x1], 0  ;;  %s1217_s15 = smov 0   ;;  %s1219_s16 = smov 0  }
   0x4   :  { %s1221_s17 = smov 0   ;;  %s1223_s18 = smov 0  }
   0x5 LB: > { %s1238_s19 = sadd.s32 4294967295, %s1184_s18   ;;  %s832_s20 = sadd.s32 4294967294, %s1184_s18   ;;  %s1184_s18 = sphi %s1223_s18, %s1497_s18   ;;  %s1180_s17 = sphi %s1221_s17, %s1496_s17   ;;  %s1176_s16 = sphi %s1219_s16, %s1495_s16   ;;  %s1172_s15 = sphi %s1217_s15, %s1494_s15  }
   0x6   : > { %s1242_s21 = sadd.s32 1, %s1184_s18   ;;  %s106_s22 = sadd.s32 1, %s1180_s17 }
   0x7   : > { %s103_s23 = ssub.s32 %s1184_s18, %s1242_s21  ;;  %p116_p0 = scmp.ne.s32.totalorder %s1180_s17, %s1176_s16 }
   0x8   : > { %p104_p1 = scmp.eq.s32.totalorder %s103_s23, 0  ;;  %p117_p2 = scmp.eq.s32.totalorder %s1238_s19, 1 }
   0x9   : > { %p122_p3 = scmp.ne.s32.totalorder %s1176_s16, %s1172_s15  ;;  %p123_p4 = scmp.eq.s32.totalorder %s832_s20, 1 }
   0xa   : > { %s1253_s24 = scalar_select %p104_p1, %s1180_s17, %s106_s22  }
   0xb   : > { %p1255_p5 = por %p117_p2, %p116_p0  ;;  %p1259_p6 = por %p123_p4, %p122_p3 }
   0xc   : > { %p835_p7 = scmp.ge.s32.totalorder %s1184_s18, 1  ;;  %p191_p8 = scmp.lt.s32.totalorder %s1184_s18, 3 }
   0xe   : > { %p192_p9 = pnand %p835_p7, %p191_p8 }
   0xf   : > { %p230_p10 = scmp.lt.s32.totalorder (!%p192_p9), %s1238_s19, 1  ;;  %s1409_s12 = sand.u32 (!%p192_p9), 1, %s1176_s16  }
  0x10   : > { %195 = sbr.rel (%p192_p9) target bundleno = 401 (0x191), region = 32  ;;  %s891_s13 = sshll.u32 (!%p192_p9), %s1238_s19, 4 }
  0x11   : > { %s223_s14 = scalar_lea.vmem (!%p192_p9), [#allocation2], %s1409_s12  ;;  %s1190_s30 = smov (!%p192_p9), [#allocation2]  }
  0x12   : > { %s712_s20 = sshll.u32 (!%p192_p9), %s223_s14, 4  ;;  %s713_s20 = int_to_ptr.vmem [resolvable:$true] %s712_s20 }
  0x13   : > { %s1094_s29 = scalar_lea.vmem (!%p192_p9), %s713_s20, 16 }
  0x14   : > { %p1095_p11 = scmp.ne.s32.totalorder (!%p192_p9), %s713_s20, %s1094_s29 }
  0x15   : > { %v1186_v0 = vmov 0   ;;  %s231_s27 = scalar_select %p230_p10, %s1238_s19, 1  ;;  %v1187_v1 = vmov 0.0   ;;  %vm1188_vm0 = vmmov 0   ;;  %vm487_vm1 = vcmask 31744  }
  0x16   : > { %1013 = vset.pattern.permute.xlu1 %v1186_v0  ;;  %1012 = vset.pattern.permute.xlu0 %v1186_v0  ;;  %vm692_vm12 = vcmask 647168   ;;  %p1096_p12 = pnand %p1095_p11, %p1255_p5 }
  0x17   : > { %917 = vmatprep.subr.mxu0 %v1187_v1  ;;  %940 = vmatprep.subr.mxu1 %v1187_v1  ;;  %s963_s28 = smul.u32 80, %s231_s27  ;;  %s1418_s27 = scalar_lea.hbm %s1490_s3, %s891_s13 }
  0x18   : > { %937 = vmatprep.mubr.msk.f32.mxu0 %vm1188_vm0, %v1187_v1  ;;  %960 = vmatprep.mubr.msk.f32.mxu1 %vm1188_vm0, %v1187_v1  ;;  %p1097_p13 = pneg %p1096_p12 }
  0x19   : > { %s1272_s5 = scalar_lea.vmem %s1489_s2, %s963_s28  ;;  %s1279_s8 = scalar_lea.vmem %s1488_s1, %s963_s28 }
  0x1a   : > { %v416_v2 = vld [vmem:[%s1272_s5 + $0x48] sm:$0xff]  ;;  %v414_v3 = vld [vmem:[%s1272_s5 + $0x38] sm:$0xff]  ;;  %s1284_s11 = scalar_lea.vmem %s1487_s0, %s963_s28  ;;  %v415_v4 = vld [vmem:[%s1272_s5 + $0x40] sm:$0xff]  ;;  %s696_s28 = scalar_lea.sflag [#allocation3], %s1409_s12 }
  0x1b   : > { %445 = vperm.xlu0 %1012, %v416_v2   ;;  %439 = vperm.xlu1 %1013, %v414_v3   ;;  %v413_v5 = vld [vmem:[%s1272_s5 + $0x30] sm:$0xff]  ;;  %v1289_v6 = vld [vmem:[%s1279_s8 + $0x48] sm:$0xff]  ;;  %v1292_v7 = vld [vmem:[%s1279_s8 + $0x38] sm:$0xff] }
  0x1c   : > { %v858_v8 = vmul.f32 -1.442695, %v1289_v6  ;;  %v856_v9 = vmul.f32 -1.442695, %v1292_v7  ;;  %v254_v10 = vld [vmem:[%s1284_s11 + $0x48] sm:$0xff]  ;;  %v1298_v11 = vld [vmem:[%s1279_s8 + $0x40] sm:$0xff] }
  0x1d   : > { %v848_v12 = vmul.f32 -1.442695, %v254_v10  ;;  %v857_v13 = vmul.f32 -1.442695, %v1298_v11  ;;  %v1302_v14 = vld [vmem:[%s1279_s8 + $0x30] sm:$0xff]  ;;  %v253_v15 = vld [vmem:[%s1284_s11 + $0x40] sm:$0xff] }
  0x1e   : > { %v412_v16 = vld [vmem:[%s1272_s5 + $0x28] sm:$0xff]  ;;  %v411_v17 = vld [vmem:[%s1272_s5 + $0x20] sm:$0xff]  ;;  %1014 = vpow2.f32 %v858_v8  ;;  %v855_v18 = vmul.f32 -1.442695, %v1302_v14  ;;  %v847_v20 = vmul.f32 -1.442695, %v253_v15 }
  0x1f   : > { %442 = vperm.xlu0 %1012, %v415_v4   ;;  %436 = vperm.xlu1 %1013, %v413_v5   ;;  %v1309_v19 = vld [vmem:[%s1279_s8 + $0x28] sm:$0xff]  ;;  %1016 = vpow2.f32 %v856_v9  ;;  %v252_v21 = vld [vmem:[%s1284_s11 + $0x38] sm:$0xff]  ;;  %v1313_v22 = vld [vmem:[%s1279_s8 + $0x20] sm:$0xff] }
  0x20   : > { %1018 = vpow2.f32 %v848_v12  ;;  %v854_v23 = vmul.f32 -1.442695, %v1309_v19  ;;  %v410_v24 = vld [vmem:[%s1272_s5 + $0x18] sm:$0xff]  ;;  %v409_v25 = vld [vmem:[%s1272_s5 + $0x10] sm:$0xff]  ;;  %v846_v26 = vmul.f32 -1.442695, %v252_v21 }
  0x21   : > { %1020 = vpow2.f32 %v857_v13  ;;  %v251_v27 = vld [vmem:[%s1284_s11 + $0x30] sm:$0xff]  ;;  %v853_v28 = vmul.f32 -1.442695, %v1313_v22  ;;  %v250_v30 = vld [vmem:[%s1284_s11 + $0x28] sm:$0xff]  ;;  %v407_v32 = vld [vmem:[%s1272_s5] sm:$0xff] }
  0x22   : > { %1022 = vpow2.f32 %v855_v18  ;;  %v845_v29 = vmul.f32 -1.442695, %v251_v27  ;;  %v408_v31 = vld [vmem:[%s1272_s5 + $0x8] sm:$0xff]  ;;  %v249_v33 = vld [vmem:[%s1284_s11 + $0x20] sm:$0xff]  ;;  %v1325_v34 = vld [vmem:[%s1279_s8 + $0x18] sm:$0xff]  ;;  %s1098_s5 = sshll.u32 %s1190_s30, 4  ;;  %s1099_s5 = int_to_ptr.vmem [resolvable:$false] %s1098_s5 }
  0x23   : > { %433 = vperm.xlu0 %1012, %v412_v16   ;;  %430 = vperm.xlu1 %1013, %v411_v17   ;;  %1024 = vpow2.f32 %v847_v20  ;;  %v844_v35 = vmul.f32 -1.442695, %v250_v30  ;;  %v843_v36 = vmul.f32 -1.442695, %v249_v33  ;;  %v852_v38 = vmul.f32 -1.442695, %v1325_v34  ;;  %p1101_p0 = scmp.lt.s32.totalorder %s713_s20, %s1099_s5 }
  0x24   : > { %1026 = vpow2.f32 %v854_v23  ;;  %v1329_v39 = vld [vmem:[%s1279_s8 + $0x10] sm:$0xff]  ;;  %v1333_v46 = vld [vmem:[%s1279_s8 + $0x8] sm:$0xff]  ;;  %v1337_v53 = vld [vmem:[%s1279_s8] sm:$0xff]  ;;  %s1100_s6 = scalar_lea.vmem %s1099_s5, 32 }
  0x25   : > { %1028 = vpow2.f32 %v846_v26  ;;  %v851_v45 = vmul.f32 -1.442695, %v1329_v39  ;;  %v850_v52 = vmul.f32 -1.442695, %v1333_v46  ;;  %v849_v59 = vmul.f32 -1.442695, %v1337_v53  ;;  %p1102_p1 = scmp.lt.s32.totalorder %s1100_s6, %s1094_s29 }
  0x26   : > { %1030 = vpow2.f32 %v853_v28  ;;  %v248_v0 = vld [vmem:[%s1284_s11 + $0x18] sm:$0xff]  ;;  %v247_v2 = vld [vmem:[%s1284_s11 + $0x10] sm:$0xff]  ;;  %v246_v4 = vld [vmem:[%s1284_s11 + $0x8] sm:$0xff] }
  0x27   : > { %427 = vperm.xlu0 %1012, %v410_v24   ;;  %424 = vperm.xlu1 %1013, %v409_v25   ;;  %1032 = vpow2.f32 %v845_v29  ;;  %v842_v9 = vmul.f32 -1.442695, %v248_v0  ;;  %v245_v10 = vld [vmem:[%s1284_s11] sm:$0xff]  ;;  %v841_v15 = vmul.f32 -1.442695, %v247_v2  ;;  %p1103_p2 = por %p1102_p1, %p1101_p0 }
  0x28   : > { %1034 = vpow2.f32 %v844_v35  ;;  %v840_v17 = vmul.f32 -1.442695, %v246_v4  ;;  %v839_v20 = vmul.f32 -1.442695, %v245_v10 }
  0x29   : > { %1036 = vpow2.f32 %v843_v36  ;;  %p1104_p3 = pnand %p1103_p2, %p1097_p13 }
  0x2b   : > { %421 = vperm.xlu0 %1012, %v408_v31   ;;  %418 = vperm.xlu1 %1013, %v407_v32   ;;  %v1015_v37 = vpop.eup %1014 }
  0x2c   : > { %v1017_v40 = vpop.eup %1016  ;;  %v364_v41 = vadd.f32 1.0, %v1015_v37 }
  0x2d   : > { %v1019_v42 = vpop.eup %1018  ;;  %v362_v50 = vadd.f32 1.0, %v1017_v40 }
  0x2e   : > { %v1021_v43 = vpop.eup %1020  ;;  %1038 = vrcp.f32 %v364_v41  ;;  %v294_v44 = vadd.f32 1.0, %v1019_v42 }
  0x2f   : > { %v1023_v47 = vpop.eup %1022  ;;  %v363_v48 = vadd.f32 1.0, %v1021_v43  ;;  %1040 = vpow2.f32 %v852_v38 }
  0x30   : > { %v1025_v49 = vpop.eup %1024  ;;  %1042 = vrcp.f32 %v294_v44  ;;  %v361_v56 = vadd.f32 1.0, %v1023_v47 }
  0x31   : > { %1044 = vrcp.f32 %v363_v48  ;;  %v293_v51 = vadd.f32 1.0, %v1025_v49  ;;  %v1027_v54 = vpop.eup %1026 }
  0x32   : > { %1046 = vpow2.f32 %v851_v45  ;;  %v1029_v55 = vpop.eup %1028  ;;  %v360_v61 = vadd.f32 1.0, %v1027_v54 }
  0x33   : > { %1048 = vrcp.f32 %v293_v51  ;;  %v1031_v57 = vpop.eup %1030  ;;  %v292_v58 = vadd.f32 1.0, %v1029_v55 }
  0x34   : > { %1050 = vrcp.f32 %v362_v50  ;;  %v1033_v60 = vpop.eup %1032  ;;  %v359_v62 = vadd.f32 1.0, %v1031_v57 }
  0x35   : > { %1052 = vpow2.f32 %v850_v52  ;;  %v291_v63 = vadd.f32 1.0, %v1033_v60  ;;  %v1035_v3 = vpop.eup %1034 }
  0x36   : > { %1054 = vrcp.f32 %v292_v58  ;;  %v1037_v5 = vpop.eup %1036  ;;  %v290_v8 = vadd.f32 1.0, %v1035_v3 }
  0x37   : > { %1056 = vrcp.f32 %v361_v56  ;;  %v289_v13 = vadd.f32 1.0, %v1037_v5 }
  0x38   : > { %1058 = vpow2.f32 %v849_v59 }
  0x39   : > { %1060 = vrcp.f32 %v291_v63 }
  0x3a   : > { %1062 = vrcp.f32 %v360_v61 }
  0x3b   : > { %v1039_v12 = vpop.eup %1038  ;;  %1064 = vrcp.f32 %v359_v62 }
  0x3c   : > { %v1041_v16 = vpop.eup %1040  ;;  %1066 = vrcp.f32 %v290_v8 }
  0x3d   : > { %v1043_v18 = vpop.eup %1042  ;;  %1068 = vrcp.f32 %v289_v13  ;;  %v358_v40 = vadd.f32 1.0, %v1041_v16 }
  0x3e   : > { %v1045_v21 = vpop.eup %1044  ;;  %v394_v23 = vsub.f32 %v1043_v18, %v1039_v12  ;;  %1070 = vpow2.f32 %v842_v9 }
  0x3f   : > { %v1047_v24 = vpop.eup %1046  ;;  %1072 = vpow2.f32 %v841_v15 }
  0x40   : > { %v1049_v25 = vpop.eup %1048  ;;  %v404_v26 = vmul.f32 %v394_v23, %v394_v23  ;;  %1074 = vpow2.f32 %v840_v17  ;;  %v357_v43 = vadd.f32 1.0, %v1047_v24  ;;  %v405_v23 = vlaneseq }
  0x41   : > { %v1051_v27 = vpop.eup %1050  ;;  %v393_v28 = vsub.f32 %v1049_v25, %v1045_v21  ;;  %1076 = vpow2.f32 %v839_v20  ;;  %v1189_v21 = vmov 1.0  }
  0x42   : > { %v1053_v29 = vpop.eup %1052  ;;  %918 = vmatpush3.xpose.msk.msra.mxu0 %vm487_vm1, %v404_v26  ;;  %1078 = vrcp.f32 %v358_v40  ;;  %v406_v24 = vand.u32 127, %v405_v23 }
  0x43   : > { %v1055_v30 = vpop.eup %1054  ;;  %919 = vmatprep.subr.mxu0 %v1187_v1  ;;  %v403_v31 = vmul.f32 %v393_v28, %v393_v28  ;;  %v356_v45 = vadd.f32 1.0, %v1053_v29  ;;  %1080 = vrcp.f32 %v357_v43 }
  0x44   : > { %v1057_v32 = vpop.eup %1056  ;;  %v392_v33 = vsub.f32 %v1055_v30, %v1051_v27 }
  0x45   : > { %v1059_v35 = vpop.eup %1058  ;;  %1082 = vrcp.f32 %v356_v45 }
  0x46   : > { %v1061_v36 = vpop.eup %1060  ;;  %920 = vmatpush3.xpose.msk.msra.mxu0 %vm487_vm1, %v403_v31  ;;  %v402_v37 = vmul.f32 %v392_v33, %v392_v33  ;;  %v355_v60 = vadd.f32 1.0, %v1059_v35 }
  0x47   : > { %v1063_v38 = vpop.eup %1062  ;;  %921 = vmatprep.subr.mxu0 %v1187_v1  ;;  %v391_v41 = vsub.f32 %v1061_v36, %v1057_v32 }
  0x48   : > { %v1065_v42 = vpop.eup %1064 }
  0x49   : > { %v1067_v44 = vpop.eup %1066  ;;  %v401_v48 = vmul.f32 %v391_v41, %v391_v41 }
  0x4a   : > { %v1069_v47 = vpop.eup %1068  ;;  %922 = vmatpush3.xpose.msk.msra.mxu0 %vm487_vm1, %v402_v37  ;;  %v390_v49 = vsub.f32 %v1067_v44, %v1063_v38 }
  0x4b   : > { %v1071_v50 = vpop.eup %1070  ;;  %923 = vmatprep.subr.mxu0 %v1187_v1  ;;  %v389_v58 = vsub.f32 %v1069_v47, %v1065_v42 }
  0x4c   : > { %v1073_v51 = vpop.eup %1072  ;;  %v288_v52 = vadd.f32 1.0, %v1071_v50  ;;  %v400_v57 = vmul.f32 %v390_v49, %v390_v49 }
  0x4d   : > { %v1075_v54 = vpop.eup %1074  ;;  %v287_v55 = vadd.f32 1.0, %v1073_v51  ;;  %v399_v62 = vmul.f32 %v389_v58, %v389_v58 }
  0x4e   : > { %v1077_v56 = vpop.eup %1076  ;;  %924 = vmatpush3.xpose.msk.msra.mxu0 %vm487_vm1, %v401_v48  ;;  %1084 = vrcp.f32 %v288_v52  ;;  %v286_v59 = vadd.f32 1.0, %v1075_v54 }
  0x4f   : > { %925 = vmatprep.subr.mxu0 %v1187_v1  ;;  %1086 = vrcp.f32 %v287_v55  ;;  %v285_v61 = vadd.f32 1.0, %v1077_v56  ;;  %v1079_v63 = vpop.eup %1078 }
  0x50   : > { %1088 = vrcp.f32 %v286_v59  ;;  %v1081_v0 = vpop.eup %1080 }
  0x51   : > { %1090 = vrcp.f32 %v355_v60 }
  0x52   : > { %926 = vmatpush3.xpose.msk.msra.mxu0 %vm487_vm1, %v400_v57  ;;  %1092 = vrcp.f32 %v285_v61  ;;  %v1083_v2 = vpop.eup %1082 }
  0x53   : > { %927 = vmatprep.subr.mxu0 %v1187_v1 }
  0x56   : > { %928 = vmatpush3.xpose.msk.msra.mxu0 %vm487_vm1, %v399_v62 }
  0x57   : > { %929 = vmatprep.subr.mxu0 %v1187_v1 }
  0x5b   : > { %v1085_v3 = vpop.eup %1084 }
  0x5c   : > { %v1087_v4 = vpop.eup %1086  ;;  %v388_v5 = vsub.f32 %v1085_v3, %v1079_v63 }
  0x5d   : > { %v1089_v8 = vpop.eup %1088  ;;  %v387_v9 = vsub.f32 %v1087_v4, %v1081_v0 }
  0x5e   : > { %v398_v10 = vmul.f32 %v388_v5, %v388_v5  ;;  %v1091_v12 = vpop.eup %1090  ;;  %v386_v15 = vsub.f32 %v1089_v8, %v1083_v2 }
  0x5f   : > { %v397_v13 = vmul.f32 %v387_v9, %v387_v9  ;;  %v1093_v16 = vpop.eup %1092 }
  0x60   : > { %930 = vmatpush3.xpose.msk.msra.mxu0 %vm487_vm1, %v398_v10  ;;  %v396_v17 = vmul.f32 %v386_v15, %v386_v15  ;;  %v385_v18 = vsub.f32 %v1093_v16, %v1091_v12 }
  0x61   : > { %931 = vmatprep.subr.mxu0 %v1187_v1 }
  0x62   : > { %v395_v20 = vmul.f32 %v385_v18, %v385_v18 }
  0x64   : > { %932 = vmatpush3.xpose.msk.msra.mxu0 %vm487_vm1, %v397_v13 }
  0x65   : > { %933 = vmatprep.subr.mxu0 %v1187_v1 }
  0x68   : > { %934 = vmatpush3.xpose.msk.msra.mxu0 %vm487_vm1, %v396_v17 }
  0x69   : > { %935 = vmatprep.subr.mxu0 %v1187_v1 }
  0x6c   : > { %936 = vmatpush3.xpose.msk.msra.mxu0 %vm487_vm1, %v395_v20 }
  0x6f   : > { %938 = vmatmul.mubr.msk.f32.vlgmr.msra.gmra.mxu0 %vm487_vm1, %v1189_v21 }
  0x96   : > { %v446_v25 = vpop.permute.xlu0 %445  ;;  %v440_v27 = vpop.permute.xlu1 %439 }
  0x97   : > { %vm456_vm2 = vcmp.eq.s32.totalorder %v406_v24, %v446_v25  ;;  %vm454_vm3 = vcmp.eq.s32.totalorder %v406_v24, %v440_v27 }
  0x98   : > { %v868_v26 = vsel %vm456_vm2, 1.0, %v1187_v1  ;;  %v866_v30 = vsel %vm454_vm3, 1.0, %v1187_v1 }
  0x99   : > { %v486_v28 = vmul.f32 %v868_v26, %v1289_v6  ;;  %v484_v35 = vmul.f32 %v866_v30, %v1292_v7 }
  0x9a   : > { %v443_v29 = vpop.permute.xlu0 %442  ;;  %v437_v33 = vpop.permute.xlu1 %436 }
  0x9b   : > { %vm455_vm4 = vcmp.eq.s32.totalorder %v406_v24, %v443_v29  ;;  %941 = vmatpush3.xpose.msk.msra.mxu1 %vm487_vm1, %v486_v28  ;;  %vm453_vm5 = vcmp.eq.s32.totalorder %v406_v24, %v437_v33 }
  0x9c   : > { %v867_v31 = vsel %vm455_vm4, 1.0, %v1187_v1  ;;  %942 = vmatprep.subr.mxu1 %v1187_v1  ;;  %v865_v36 = vsel %vm453_vm5, 1.0, %v1187_v1 }
  0x9d   : > { %v485_v32 = vmul.f32 %v867_v31, %v1298_v11  ;;  %v483_v38 = vmul.f32 %v865_v36, %v1302_v14 }
  0x9e   : > { %v434_v6 = vpop.permute.xlu0 %433  ;;  %v431_v37 = vpop.permute.xlu1 %430 }
  0x9f   : > { %943 = vmatpush3.xpose.msk.msra.mxu1 %vm487_vm1, %v485_v32  ;;  %vm452_vm6 = vcmp.eq.s32.totalorder %v406_v24, %v434_v6  ;;  %vm451_vm7 = vcmp.eq.s32.totalorder %v406_v24, %v431_v37 }
  0xa0   : > { %944 = vmatprep.subr.mxu1 %v1187_v1  ;;  %v864_v11 = vsel %vm452_vm6, 1.0, %v1187_v1  ;;  %v863_v41 = vsel %vm451_vm7, 1.0, %v1187_v1 }
  0xa1   : > { %v482_v40 = vmul.f32 %v864_v11, %v1309_v19  ;;  %v481_v14 = vmul.f32 %v863_v41, %v1313_v22 }
  0xa2   : > { %v428_v7 = vpop.permute.xlu0 %427  ;;  %v425_v42 = vpop.permute.xlu1 %424 }
  0xa3   : > { %945 = vmatpush3.xpose.msk.msra.mxu1 %vm487_vm1, %v484_v35  ;;  %vm450_vm8 = vcmp.eq.s32.totalorder %v406_v24, %v428_v7  ;;  %vm449_vm9 = vcmp.eq.s32.totalorder %v406_v24, %v425_v42 }
  0xa4   : > { %946 = vmatprep.subr.mxu1 %v1187_v1  ;;  %v862_v43 = vsel %vm450_vm8, 1.0, %v1187_v1  ;;  %v861_v45 = vsel %vm449_vm9, 1.0, %v1187_v1 }
  0xa5   : > { %v480_v19 = vmul.f32 %v862_v43, %v1325_v34  ;;  %v479_v22 = vmul.f32 %v861_v45, %v1329_v39 }
  0xa6   : > { %v422_v44 = vpop.permute.xlu0 %421  ;;  %v419_v47 = vpop.permute.xlu1 %418 }
  0xa7   : > { %947 = vmatpush3.xpose.msk.msra.mxu1 %vm487_vm1, %v483_v38  ;;  %vm448_vm10 = vcmp.eq.s32.totalorder %v406_v24, %v422_v44  ;;  %vm447_vm11 = vcmp.eq.s32.totalorder %v406_v24, %v419_v47 }
  0xa8   : > { %948 = vmatprep.subr.mxu1 %v1187_v1  ;;  %v860_v48 = vsel %vm448_vm10, 1.0, %v1187_v1  ;;  %v859_v49 = vsel %vm447_vm11, 1.0, %v1187_v1 }
  0xa9   : > { %v478_v34 = vmul.f32 %v860_v48, %v1333_v46  ;;  %v477_v50 = vmul.f32 %v859_v49, %v1337_v53 }
  0xab   : > { %949 = vmatpush3.xpose.msk.msra.mxu1 %vm487_vm1, %v482_v40 }
  0xac   : > { %950 = vmatprep.subr.mxu1 %v1187_v1 }
  0xaf   : > { %951 = vmatpush3.xpose.msk.msra.mxu1 %vm487_vm1, %v481_v14 }
  0xb0   : > { %952 = vmatprep.subr.mxu1 %v1187_v1 }
  0xb3   : > { %953 = vmatpush3.xpose.msk.msra.mxu1 %vm487_vm1, %v480_v19 }
  0xb4   : > { %954 = vmatprep.subr.mxu1 %v1187_v1 }
  0xb7   : > { %955 = vmatpush3.xpose.msk.msra.mxu1 %vm487_vm1, %v479_v22 }
  0xb8   : > { %956 = vmatprep.subr.mxu1 %v1187_v1 }
  0xbb   : > { %957 = vmatpush3.xpose.msk.msra.mxu1 %vm487_vm1, %v478_v34 }
  0xbc   : > { %958 = vmatprep.subr.mxu1 %v1187_v1 }
  0xbf   : > { %959 = vmatpush3.xpose.msk.msra.mxu1 %vm487_vm1, %v477_v50 }
  0xc2   : > { %961 = vmatmul.mubr.msk.f32.vlgmr.msra.gmra.mxu1 %vm487_vm1, %v1189_v21 }
 0x12f   : > { %v587_v39 = vpop.f32.mrf.mxu0 }
 0x130   : > { %v591_v46 = vmul.f32 0.25, %v587_v39 }
 0x131   : > { %v939_v1 = vpop.f32.mrf.mxu0 }
 0x132   : > { %693 = vst.msk [vmem:[%s223_s14] sm:$0x1] %vm692_vm12, %v591_v46 }
 0x133   : > { %1107 = shalt.err (!%p1104_p3)
}
 0x134   : > { %s1108_s7 = scalar_lea.hbm %s1418_s27, 16  ;;  %s1112_s10 = scalar_lea.hbm %s1490_s3, 32 }
 0x135   : > { %p1109_p4 = scmp.ne.s32.totalorder %s1418_s27, %s1108_s7  ;;  %p1113_p9 = scmp.lt.s32.totalorder %s1418_s27, %s1490_s3 }
 0x136   : > { %p1114_p10 = scmp.lt.s32.totalorder %s1112_s10, %s1108_s7 }
 0x137   : > { %p1110_p7 = pnand %p1109_p4, %p1255_p5 }
 0x138   : > { %p1115_p11 = por %p1114_p10, %p1113_p9 }
 0x139   : > { %p1111_p8 = pneg %p1110_p7 }
 0x13b   : > { %p1116_p12 = pnand %p1115_p11, %p1111_p8 }
 0x13d   : > { %1119 = shalt.err (!%p1116_p12)
}
 0x13e   : > { %964 = dma.vmem_to_hbm [thread:$0]  (%p1255_p5), %s713_s20, 16, %s1418_s27, %s696_s28  }
 0x13f   : > { %s229_s22 = scalar_lea.vmem [#allocation4], %s1409_s12  ;;  %s1444_s5 = scalar_lea.hbm %s1491_s4, %s891_s13 }
 0x140   : > { %s725_s23 = sshll.u32 %s229_s22, 4  ;;  %s700_s6 = scalar_lea.sflag [#allocation5], %s1409_s12  ;;  %s1446_s23 = int_to_ptr.vmem [resolvable:$true] %s725_s23 }
 0x141   : > { %s1120_s7 = scalar_lea.vmem %s1446_s23, 16  ;;  %s1191_s19 = smov [#allocation4]  }
 0x142   : > { %p1121_p13 = scmp.ne.s32.totalorder %s1446_s23, %s1120_s7  ;;  %s1124_s20 = sshll.u32 %s1191_s19, 4  ;;  %s1125_s20 = int_to_ptr.vmem [resolvable:$false] %s1124_s20 }
 0x143   : > { %s1126_s13 = scalar_lea.vmem %s1125_s20, 32  ;;  %p1127_p2 = scmp.lt.s32.totalorder %s1446_s23, %s1125_s20 }
 0x144   : > { %p1122_p0 = pnand %p1121_p13, %p1255_p5  ;;  %p1128_p3 = scmp.lt.s32.totalorder %s1126_s13, %s1120_s7 }
 0x146   : > { %p1123_p1 = pneg %p1122_p0  ;;  %p1129_p4 = por %p1128_p3, %p1127_p2 }
 0x148   : > { %p1130_p7 = pnand %p1129_p4, %p1123_p1 }
 0x182   : > { %v688_v53 = vpop.f32.mrf.mxu1 }
 0x183   : > { %694 = vst.msk [vmem:[%s229_s22] sm:$0x1] %vm692_vm12, %v688_v53 }
 0x184   : > { %v962_v51 = vpop.f32.mrf.mxu1 }
 0x185   : > { %1133 = shalt.err (!%p1130_p7)
}
 0x186   : > { %s1134_s27 = scalar_lea.hbm %s1444_s5, 16  ;;  %s1138_s8 = scalar_lea.hbm %s1491_s4, 32 }
 0x187   : > { %p1135_p8 = scmp.ne.s32.totalorder %s1444_s5, %s1134_s27  ;;  %p1139_p11 = scmp.lt.s32.totalorder %s1444_s5, %s1491_s4 }
 0x188   : > { %p1140_p12 = scmp.lt.s32.totalorder %s1138_s8, %s1134_s27 }
 0x189   : > { %p1136_p9 = pnand %p1135_p8, %p1255_p5 }
 0x18a   : > { %p1141_p13 = por %p1140_p12, %p1139_p11 }
 0x18b   : > { %p1137_p10 = pneg %p1136_p9 }
 0x18d   : > { %p1142_p0 = pnand %p1141_p13, %p1137_p10 }
 0x18f   : > { %1145 = shalt.err (!%p1142_p0)
}
 0x190   : > { %965 = dma.vmem_to_hbm [thread:$0]  (%p1255_p5), %s1446_s23, 16, %s1444_s5, %s700_s6  }
 0x191 PF: > { %p975_p1 = scmp.ge.s32.totalorder %s1184_s18, 2  ;;  %s737_s11 = sand.u32 1, %s1172_s15  }
 0x192   : > { %s738_s14 = scalar_lea.sflag [#allocation3], %s737_s11 }
 0x193   : > { %p969_p2 = pnand %p975_p1, %p1259_p6 }
 0x195   : > { %p970_p3 = pneg %p969_p2 }
 0x197   : > { %1163 = dma.done.wait (%p970_p3), %s738_s14, 16  }
 0x198   : > { %1165 = vsyncadd (%p970_p3), %s738_s14, 4294967280  ;;  %s746_s22 = scalar_lea.sflag [#allocation5], %s737_s11 }
 0x199   : > { %1167 = dma.done.wait (%p970_p3), %s746_s22, 16  }
 0x19a   : > { %1169 = vsyncadd (%p970_p3), %s746_s22, 4294967280  ;;  %p18_p5 = scmp.ge.s32.totalorder %s1242_s21, 4   ;;  %s1494_s15 = smov %s1176_s16 }
 0x19b   : > { %s1495_s16 = smov %s1180_s17  ;;  %s1496_s17 = smov %s1253_s24 }
 0x19c   : > { %s1497_s18 = smov %s1242_s21  ;;  %20 = sbr.rel (!%p18_p5) target bundleno = 5 (0x5), region = 90 }
 0x1a1   :  { %750 = vsyncpa [#allocation3], 1 }
 0x1a2   :  { %752 = vsyncpa [#allocation3 + $0x1], 1 }
 0x1a3   :  { %753 = vsyncpa [#allocation5], 1 }
 0x1a4   :  { %755 = vsyncpa [#allocation5 + $0x1], 1 }

</bundles_post_ra>
